<compile_context>
chip_gen: v7x
topology: tpu7x:2x2x1
jax: 0.10.0
libtpu: 0.0.40
codegen_flags: <defaults>
</compile_context>

<pallas_src>
import functools

import jax
import jax.numpy as jnp
from jax.experimental import pallas as pl
from jax.experimental.pallas import tpu as pltpu


def _round_up(a, b):
    return (a + b - 1) // b * b


def _classifier_kernel(x_ref, w1_ref, b1_ref, w2_ref, b2_ref,
                       out_ref, hid_ref):
    # x_ref:  (tm, D)    input activation tile
    # w1_ref: (D, D)     first linear weight, transposed so we do x @ w1
    # b1_ref: (1, D)     first linear bias
    # w2_ref: (D, Lp)    output linear weight, transposed + lane-padded
    # b2_ref: (1, Lp)    output linear bias, lane-padded
    # out_ref: (tm, Lp)  logits tile (lane-dense)
    # hid_ref: (tm, D)   hidden tile (post-tanh; dropout == identity)
    x = x_ref[...]

    # hidden = tanh(x @ W1^T + b1): MXU matmul (f32 accumulate) + EUP tanh.
    h = jnp.dot(x, w1_ref[...], preferred_element_type=jnp.float32)
    h = jnp.tanh(h + b1_ref[...])

    # Down-cast once; reuse for both the store and the second matmul.
    h_lo = h.astype(hid_ref.dtype)
    hid_ref[...] = h_lo

    # output = hidden @ W2^T + b2
    o = jnp.dot(h_lo, w2_ref[...], preferred_element_type=jnp.float32)
    out_ref[...] = (o + b2_ref[...]).astype(out_ref.dtype)


@functools.partial(jax.jit, static_argnames=("tm",))
def weather_label_classifier(x, w1, b1, w2, b2, *, tm=512):
    """Fused forward pass of WeatherLabelClassifier.

    Args:
      x:  (..., d_model) activations.
      w1: (d_model, d_model) PyTorch-convention (out, in) weight of `linear`.
      b1: (d_model,)          bias of `linear`.
      w2: (num_label, d_model) PyTorch-convention weight of `output`.
      b2: (num_label,)         bias of `output`.
      tm: M-tile size (rows per grid step); clamped / rounded internally.

    Returns:
      (output, hidden) with shapes (..., num_label) and (..., d_model).
    """
    d_model = x.shape[-1]
    num_label = w2.shape[0]
    lead = x.shape[:-1]
    m = 1
    for s in lead:
        m *= s

    # --- Tile sizing: tm multiple of 8, M padded to a multiple of tm. ------
    tm_eff = min(int(tm), _round_up(m, 8))
    tm_eff = max(8, _round_up(tm_eff, 8))
    m_pad = _round_up(m, tm_eff)
    grid_m = m_pad // tm_eff

    # --- Lane-dense logits: pad num_label up to a multiple of 128. ---------
    l_pad = _round_up(num_label, 128)

    x2 = x.reshape(m, d_model)
    if m_pad != m:
        x2 = jnp.pad(x2, ((0, m_pad - m), (0, 0)))

    # Transpose PyTorch (out, in) weights so the kernel computes x @ W.
    # Under jit these fold into the same XLA program (no extra HBM round trip
    # per call); in production, pre-transpose at parameter-load time.
    w1_t = jnp.transpose(w1)                                   # (D, D)
    w2_t = jnp.transpose(w2)                                   # (D, L)
    if l_pad != num_label:
        w2_t = jnp.pad(w2_t, ((0, 0), (0, l_pad - num_label)))
        b2 = jnp.pad(b2, ((0, l_pad - num_label),))
    b1_2 = b1.reshape(1, d_model)
    b2_2 = b2.reshape(1, l_pad)

    # --- VMEM budget: double-buffered streaming tiles + resident weights. --
    isz = x.dtype.itemsize
    est = (2 * tm_eff * (2 * d_model + l_pad) * isz            # x, hid, out
           + 2 * (d_model * d_model + d_model * l_pad
                  + d_model + l_pad) * isz)                    # weights/bias
    vmem_limit = int(max(32 << 20, min(2 * est + (4 << 20), 64 << 20)))

    out, hid = pl.pallas_call(
        _classifier_kernel,
        out_shape=(
            jax.ShapeDtypeStruct((m_pad, l_pad), x.dtype),
            jax.ShapeDtypeStruct((m_pad, d_model), x.dtype),
        ),
        grid_spec=pltpu.PrefetchScalarGridSpec(
            num_scalar_prefetch=0,
            grid=(grid_m,),
            in_specs=[
                pl.BlockSpec((tm_eff, d_model), lambda i: (i, 0)),   # x tile
                pl.BlockSpec((d_model, d_model), lambda i: (0, 0)),  # W1 res.
                pl.BlockSpec((1, d_model), lambda i: (0, 0)),        # b1
                pl.BlockSpec((d_model, l_pad), lambda i: (0, 0)),    # W2 res.
                pl.BlockSpec((1, l_pad), lambda i: (0, 0)),          # b2
            ],
            out_specs=[
                pl.BlockSpec((tm_eff, l_pad), lambda i: (i, 0)),     # logits
                pl.BlockSpec((tm_eff, d_model), lambda i: (i, 0)),   # hidden
            ],
        ),
        compiler_params=pltpu.CompilerParams(
            dimension_semantics=("parallel",),   # v7x: shard M over both TCs
            vmem_limit_bytes=vmem_limit,
        ),
    )(x2, w1_t, b1_2, w2_t, b2_2)

    out = out[:m, :num_label].reshape(*lead, num_label)
    hid = hid[:m, :].reshape(*lead, d_model)
    return out, hid


def _reference(x, w1, b1, w2, b2):
    h = jnp.tanh(jnp.einsum("...d,ed->...e", x, w1) + b1)
    o = jnp.einsum("...d,ld->...l", h, w2) + b2
    return o, h


if __name__ == "__main__":
    # Small shapes: batch=2, seq=8, d_model=32, num_label=4.
    batch, seq, d_model, num_label = 2, 8, 32, 4

    key = jax.random.PRNGKey(0)
    kx, k1, k2, k3, k4 = jax.random.split(key, 5)

    x = jax.random.normal(kx, (batch, seq, d_model), dtype=jnp.float32)
    # Deterministic "Linear" parameters (PyTorch convention: (out, in)).
    bound1 = 1.0 / (d_model ** 0.5)
    w1 = jax.random.uniform(k1, (d_model, d_model), jnp.float32,
                            -bound1, bound1)
    b1 = jax.random.uniform(k2, (d_model,), jnp.float32, -bound1, bound1)
    w2 = jax.random.uniform(k3, (num_label, d_model), jnp.float32,
                            -bound1, bound1)
    b2 = jax.random.uniform(k4, (num_label,), jnp.float32, -bound1, bound1)

    out, hid = weather_label_classifier(x, w1, b1, w2, b2)
    out = jax.block_until_ready(out)
    hid = jax.block_until_ready(hid)

    ref_out, ref_hid = _reference(x, w1, b1, w2, b2)
    assert out.shape == (batch, seq, num_label)
    assert hid.shape == (batch, seq, d_model)
    assert jnp.allclose(out, ref_out, atol=1e-5, rtol=1e-5)
    assert jnp.allclose(hid, ref_hid, atol=1e-5, rtol=1e-5)

    print("KERNEL_OK")
</pallas_src>

<mosaic_0001>
module attributes {stable_mosaic.version = 11 : i64} {
  func.func @_classifier_kernel(%arg0: i32, %arg1: memref<16x32xf32, #tpu.memory_space<vmem>>, %arg2: memref<32x32xf32, #tpu.memory_space<vmem>>, %arg3: memref<1x32xf32, #tpu.memory_space<vmem>>, %arg4: memref<32x128xf32, #tpu.memory_space<vmem>>, %arg5: memref<1x128xf32, #tpu.memory_space<vmem>>, %arg6: memref<16x128xf32, #tpu.memory_space<vmem>>, %arg7: memref<16x32xf32, #tpu.memory_space<vmem>>) attributes {dimension_semantics = [#tpu.dimension_semantics<parallel>], iteration_bounds = array<i64: 1>, scalar_prefetch = 0 : i64, scratch_operands = 0 : i64, tpu.core_type = #tpu.core_type<tc>, window_params = [{transform_indices = @transform_0, window_bounds = array<i64: 16, 32>}, {pipeline_mode = #tpu.pipeline_mode<synchronous>, transform_indices = @transform_1, window_bounds = array<i64: 32, 32>}, {pipeline_mode = #tpu.pipeline_mode<synchronous>, transform_indices = @transform_2, window_bounds = array<i64: 1, 32>}, {pipeline_mode = #tpu.pipeline_mode<synchronous>, transform_indices = @transform_3, window_bounds = array<i64: 32, 128>}, {pipeline_mode = #tpu.pipeline_mode<synchronous>, transform_indices = @transform_4, window_bounds = array<i64: 1, 128>}, {transform_indices = @transform_5, window_bounds = array<i64: 16, 128>}, {transform_indices = @transform_6, window_bounds = array<i64: 16, 32>}]} {
    %c0 = arith.constant 0 : index
    %c0_0 = arith.constant 0 : index
    %0 = vector.load %arg1[%c0, %c0_0] : memref<16x32xf32, #tpu.memory_space<vmem>>, vector<16x32xf32>
    %c0_1 = arith.constant 0 : index
    %c0_2 = arith.constant 0 : index
    %1 = vector.load %arg2[%c0_1, %c0_2] : memref<32x32xf32, #tpu.memory_space<vmem>>, vector<32x32xf32>
    %cst = arith.constant dense<0.000000e+00> : vector<16x32xf32>
    %2 = tpu.matmul %0, %1, %cst {dimension_numbers = #tpu.dot_dimension_numbers<[1], [0], [0], [1], [0, 0, 1, 1], [], []>} : vector<16x32xf32>, vector<32x32xf32>, vector<16x32xf32> -> vector<16x32xf32>
    %c0_3 = arith.constant 0 : index
    %c0_4 = arith.constant 0 : index
    %3 = vector.load %arg3[%c0_3, %c0_4] : memref<1x32xf32, #tpu.memory_space<vmem>>, vector<1x32xf32>
    %4 = vector.broadcast %3 : vector<1x32xf32> to vector<16x32xf32>
    %5 = arith.addf %2, %4 : vector<16x32xf32>
    %6 = math.tanh %5 : vector<16x32xf32>
    %c0_5 = arith.constant 0 : index
    %c0_6 = arith.constant 0 : index
    %7 = vector.load %arg7[%c0_5, %c0_6] : memref<16x32xf32, #tpu.memory_space<vmem>>, vector<16x32xf32>
    tpu.vector_store %arg7[%c0_5, %c0_6], %6 {strides = array<i32>} : memref<16x32xf32, #tpu.memory_space<vmem>>, vector<16x32xf32>,
    %c0_7 = arith.constant 0 : index
    %c0_8 = arith.constant 0 : index
    %8 = vector.load %arg4[%c0_7, %c0_8] : memref<32x128xf32, #tpu.memory_space<vmem>>, vector<32x128xf32>
    %cst_9 = arith.constant dense<0.000000e+00> : vector<16x128xf32>
    %9 = tpu.matmul %6, %8, %cst_9 {dimension_numbers = #tpu.dot_dimension_numbers<[1], [0], [0], [1], [0, 0, 1, 1], [], []>} : vector<16x32xf32>, vector<32x128xf32>, vector<16x128xf32> -> vector<16x128xf32>
    %c0_10 = arith.constant 0 : index
    %c0_11 = arith.constant 0 : index
    %10 = vector.load %arg5[%c0_10, %c0_11] : memref<1x128xf32, #tpu.memory_space<vmem>>, vector<1x128xf32>
    %11 = vector.broadcast %10 : vector<1x128xf32> to vector<16x128xf32>
    %12 = arith.addf %9, %11 : vector<16x128xf32>
    %c0_12 = arith.constant 0 : index
    %c0_13 = arith.constant 0 : index
    %13 = vector.load %arg6[%c0_12, %c0_13] : memref<16x128xf32, #tpu.memory_space<vmem>>, vector<16x128xf32>
    tpu.vector_store %arg6[%c0_12, %c0_13], %12 {strides = array<i32>} : memref<16x128xf32, #tpu.memory_space<vmem>>, vector<16x128xf32>,
    return
  }
  func.func @transform_0(%arg0: i32) -> (i32, i32) {
    %c0_i32 = arith.constant 0 : i32
    %c0_i32_0 = arith.constant 0 : i32
    return %arg0, %c0_i32 : i32, i32
  }
  func.func @transform_1(%arg0: i32) -> (i32, i32) {
    %c0_i32 = arith.constant 0 : i32
    %c0_i32_0 = arith.constant 0 : i32
    %c0_i32_1 = arith.constant 0 : i32
    return %c0_i32, %c0_i32_0 : i32, i32
  }
  func.func @transform_2(%arg0: i32) -> (i32, i32) {
    %c0_i32 = arith.constant 0 : i32
    %c0_i32_0 = arith.constant 0 : i32
    %c0_i32_1 = arith.constant 0 : i32
    return %c0_i32, %c0_i32_0 : i32, i32
  }
  func.func @transform_3(%arg0: i32) -> (i32, i32) {
    %c0_i32 = arith.constant 0 : i32
    %c0_i32_0 = arith.constant 0 : i32
    %c0_i32_1 = arith.constant 0 : i32
    return %c0_i32, %c0_i32_0 : i32, i32
  }
  func.func @transform_4(%arg0: i32) -> (i32, i32) {
    %c0_i32 = arith.constant 0 : i32
    %c0_i32_0 = arith.constant 0 : i32
    %c0_i32_1 = arith.constant 0 : i32
    return %c0_i32, %c0_i32_0 : i32, i32
  }
  func.func @transform_5(%arg0: i32) -> (i32, i32) {
    %c0_i32 = arith.constant 0 : i32
    %c0_i32_0 = arith.constant 0 : i32
    return %arg0, %c0_i32 : i32, i32
  }
  func.func @transform_6(%arg0: i32) -> (i32, i32) {
    %c0_i32 = arith.constant 0 : i32
    %c0_i32_0 = arith.constant 0 : i32
    return %arg0, %c0_i32 : i32, i32
  }
}

</mosaic_0001>

<bundles_post_ra>
// kernel: weather_label_classifier.1
= control target key start
LH: loop header
LB: loop body
LE: loop exit
PB: predicated region body
PF: predicated region fallthrough
CT: control target
= control target key end

     0   :  { %vm36_vm0 = vcmask 261120   ;;  %s421_s0 = inlined_call_operand.vmem [shape: f32[16,32], index: 0, kind: input, shape index: {}]   ;;  %s422_s1 = inlined_call_operand.vmem [shape: f32[32,32], index: 1, kind: input, shape index: {}]   ;;  %s423_s2 = inlined_call_operand.vmem [shape: f32[1,32], index: 2, kind: input, shape index: {}]   ;;  %s424_s3 = inlined_call_operand.vmem [shape: f32[32,128], index: 3, kind: input, shape index: {}]   ;;  %s425_s4 = inlined_call_operand.vmem [shape: f32[1,128], index: 4, kind: input, shape index: {}]   ;;  %s426_s5 = inlined_call_operand.vmem [shape: f32[16,128], index: 5, kind: output, shape index: {0}]   ;;  %s427_s6 = inlined_call_operand.hbm [shape: f32[16,32], index: 6, kind: output, shape index: {1}]  }
   0x1   :  { %v25_v0 = vld [vmem:[%s422_s1] sm:$0xff]  ;;  %v26_v1 = vld [vmem:[%s422_s1 + $0x8] sm:$0xff]  ;;  %v27_v2 = vld [vmem:[%s422_s1 + $0x10] sm:$0xff] }
   0x2   :  { %v276_v3 = vpack.c.bf16 %v26_v1, %v25_v0  ;;  %v28_v4 = vld [vmem:[%s422_s1 + $0x18] sm:$0xff]  ;;  %v23_v5 = vld [vmem:[%s421_s0] sm:$0xff] }
   0x3   :  { %v280_v6 = vpack.c.bf16 %v28_v4, %v27_v2  ;;  %262 = vmatprep.mubr.msk.f32.mxu0 %vm36_vm0, %v23_v5 }
   0x4   :  { %12 = vsyncpa [#allocation3], 0  ;;  %277 = vmatprep.subr.bf16.mxu0 %v276_v3  ;;  %v24_v7 = vld [vmem:[%s421_s0 + $0x8] sm:$0xff]  ;;  %v122_v8 = vld [vmem:[%s424_s3] sm:$0xff] }
   0x5   :  { %279 = vmatpush3.bf16.msra.mxu0 %v276_v3  ;;  %v123_v9 = vld [vmem:[%s424_s3 + $0x8] sm:$0xff]  ;;  %v124_v11 = vld [vmem:[%s424_s3 + $0x10] sm:$0xff]  ;;  %v125_v12 = vld [vmem:[%s424_s3 + $0x18] sm:$0xff]  ;;  %s323_s3 = smov [#allocation2]  }
   0x6   :  { %281 = vmatprep.subr.bf16.mxu0 %v280_v6  ;;  %v284_v10 = vpack.c.bf16 %v123_v9, %v122_v8  ;;  %v288_v13 = vpack.c.bf16 %v125_v12, %v124_v11  ;;  %v236_v14 = vld [vmem:[%s423_s2] ss:$0 sm:$0xff]  ;;  %s223_s17 = sshll.u32 %s323_s3, 4  ;;  %s224_s17 = int_to_ptr.vmem [resolvable:$true] %s223_s17 }
   0x7   :  { %s299_s2 = scalar_lea.vmem %s224_s17, 256  ;;  %p304_p1 = scmp.lt.s32.totalorder %s224_s17, %s224_s17 }
   0x8   :  { %285 = vmatprep.subr.bf16.mxu1 %v284_v10  ;;  %p300_p0 = scmp.ne.s32.totalorder %s224_s17, %s299_s2  ;;  %p305_p2 = scmp.lt.s32.totalorder %s299_s2, %s299_s2 }
   0x9   :  { %283 = vmatpush3.bf16.msra.mxu0 %v280_v6  ;;  %287 = vmatpush3.bf16.msra.mxu1 %v284_v10 }
   0xa   :  { %289 = vmatprep.subr.bf16.mxu1 %v288_v13  ;;  %p306_p3 = por %p305_p2, %p304_p1 }
   0xc   :  { %263 = vmatmul.mubr.msk.f32.vlgmr.msra.gmra.mrb[0].mxu0 %vm36_vm0, %v24_v7  ;;  %p307_p4 = pnand %p306_p3, %p300_p0 }
   0xd   :  { %291 = vmatpush3.bf16.msra.mxu1 %v288_v13 }
  0xdf   :  { %v264_v15 = vpop.f32.mrb[0].mxu0 }
  0xe0   :  { %v115_v16 = vadd.f32 %v264_v15, %v236_v14  ;;  %v109_v17 = vpop.f32.mrb[1].mxu0 }
  0xe1   :  { %v110_v18 = vadd.f32 %v236_v14, %v109_v17 }
  0xe2   :  { %295 = vtanh.f32 %v115_v16 }
  0xe3   :  { %297 = vtanh.f32 %v110_v18 }
  0xec   :  { %v296_v19 = vpop.eup %295 }
  0xed   :  { %v298_v20 = vpop.eup %297  ;;  %121 = vst.msk [vmem:[#allocation2 + $0x8] sm:$0xff] %vm36_vm0, %v296_v19 }
  0xee   :  { %120 = vst.msk [vmem:[#allocation2] sm:$0xff] %vm36_vm0, %v298_v20  ;;  %273 = vmatprep.mubr.msk.f32.mxu1 %vm36_vm0, %v298_v20 }
  0xef   :  { %274 = vmatmul.mubr.msk.f32.vlgmr.msra.gmra.mrb[0].mxu1 %vm36_vm0, %v296_v19 }
  0xf0   :  { %310 = shalt.err (!%p307_p4)
}
  0xf1   :  { %s311_s20 = scalar_lea.hbm %s427_s6, 256 }
  0xf2   :  { %p312_p5 = scmp.ne.s32.totalorder %s427_s6, %s311_s20  ;;  %p315_p6 = scmp.lt.u32.totalorder %s311_s20, %s427_s6 }
  0xf4   :  { %p317_p7 = pnand %p315_p6, %p312_p5 }
  0xf6   :  { %320 = shalt.err (!%p317_p7)
}
  0xf7   :  { %s324_s25 = smov 128   ;;  %s325_s26 = smov 8   ;;  %v239_v21 = vld [vmem:[%s425_s4] ss:$0 sm:$0xff] }
  0xf8   :  { %229 = dma.vmem_to_hbm [thread:$0]  %s224_s17, 256, %s427_s6, [#allocation3], %s324_s25, %s324_s25, %s325_s26  }
 0x1c2   :  { %v275_v22 = vpop.f32.mrb[0].mxu1 }
 0x1c3   :  { %v211_v23 = vadd.f32 %v275_v22, %v239_v21  ;;  %v205_v24 = vpop.f32.mrb[1].mxu1 }
 0x1c4   :  { %v206_v25 = vadd.f32 %v239_v21, %v205_v24 }
 0x1c5   :  { %215 = vst [vmem:[%s426_s5 + $0x8] sm:$0xff] %v211_v23 }
 0x1c6   :  { %214 = vst [vmem:[%s426_s5] sm:$0xff] %v206_v25 }
 0x1c7   :  { %321 = dma.done.wait [#allocation3], 256  }
 0x1c8   :  { %322 = vsyncadd [#allocation3], 4294967040 }
 0x1c9   :  { %235 = vsyncpa [#allocation3], 1 }

</bundles_post_ra>
